<compile_context>
chip_gen: v7x
topology: tpu7x:2x2x1
jax: 0.10.0
libtpu: 0.0.40
codegen_flags: <defaults>
</compile_context>

<pallas_src>
import math
import jax
import jax.numpy as jnp
from jax.experimental import pallas as pl
from jax.experimental.pallas import tpu as pltpu


def _discriminator_kernel(z_ref, w1_ref, b1_ref, w2_ref, b2_ref,
                          w3_ref, b3_ref, o_ref):
    """Whole MLP forward for one batch tile, entirely in VMEM (all f32)."""
    z = z_ref[...]                                            # (bt, n_input) f32

    # Linear 1 + ReLU (MXU, f32 accumulation)
    h1 = jnp.dot(z, w1_ref[...], preferred_element_type=jnp.float32) + b1_ref[...]
    h1 = jnp.maximum(h1, 0.0)

    # Linear 2 + ReLU
    h2 = jnp.dot(h1, w2_ref[...], preferred_element_type=jnp.float32) + b2_ref[...]
    h2 = jnp.maximum(h2, 0.0)

    # Linear 3 (+ Sigmoid) on the VPU/XLU: w3 is passed as a (1, h2) row, so
    # this is an elementwise multiply + cross-lane reduce instead of an MXU
    # push/pop for a 1-lane result.  The (bt, 1) logits column is transposed
    # (cheap XLU relayout) to a lane-dense (1, bt) row so the output store is
    # not a width-1 masked column.
    logits = jnp.sum(h2 * w3_ref[...], axis=-1, keepdims=True) + b3_ref[...]
    o_ref[...] = jax.nn.sigmoid(logits.T).astype(o_ref.dtype)


def _round_up(x, m):
    return ((x + m - 1) // m) * m


def _vmem_capacity_bytes():
    """Generation-aware VMEM size (v5e/v6e: 128 MiB, v7x: 64 MiB per TC)."""
    try:
        cap = int(pltpu.get_tpu_info().vmem_capacity_bytes)
        if cap > 0:
            return cap
    except Exception:
        pass
    return 64 * 1024 * 1024          # conservative (v7x-sized) fallback


def _pick_batch_tile(vmem_cap_bytes):
    """Rows per grid step: as big as a VMEM-aware budget allows, capped at 8192
    (>=1 MiB of useful z per step so the ~0.35 us fixed per-step overhead is
    amortized), multiple of 128."""
    # Per-row f32 VMEM (lane-padded to 128): z double-buffer + h1/h2 temporaries.
    per_row = (2 * 128 + 2 * 128) * 4            # 2 KiB
    per_row += per_row // 4                      # +25% margin -> 2.5 KiB/row
    budget = vmem_cap_bytes // 2                 # leave half for weights/out/compiler scratch
    bt = (budget // per_row) // 128 * 128
    return int(max(128, min(bt, 8192)))


def discriminator_forward(z, params, *, batch_tile=None):
    """z: [N, n_input] float32.  params: dict of (w1,b1,w2,b2,w3,b3).  Returns [N, 1] f32."""
    N, n_input = z.shape
    w1, b1 = params["w1"], params["b1"]   # [n_input, h1], [1, h1]
    w2, b2 = params["w2"], params["b2"]   # [h1, h2],      [1, h2]
    w3, b3 = params["w3"], params["b3"]   # [h2, 1],       [1, 1]
    h1 = w1.shape[1]
    h2 = w2.shape[1]

    if N == 0:                            # degenerate batch guard
        return jnp.zeros((0, 1), jnp.float32)

    if z.dtype != jnp.float32:            # no standalone quantizing pass; keep f32 semantics
        z = z.astype(jnp.float32)
    w3_row = jnp.reshape(w3, (1, h2))     # (h2,1) -> (1,h2) row (tiny, free)

    vmem_cap = _vmem_capacity_bytes()
    vmem_limit = min(vmem_cap * 3 // 4, 96 * 1024 * 1024)   # ~48 MiB v7x, 96 MiB v5e/v6e

    if batch_tile is None:
        bt = _pick_batch_tile(vmem_cap)
    else:
        assert batch_tile % 128 == 0, "batch_tile must be a multiple of 128"
        bt = batch_tile

    # Tile-shape legality + v7x dual-TC utilization:
    #  - small N: one full-extent block (block dims == array dims, no waste)
    #  - otherwise guarantee >=2 "parallel" grid steps so both TensorCores work
    if N < 256:
        bt = min(bt, N)
    elif bt >= N:
        bt = _round_up(-(-N // 2), 128)

    grid = (pl.cdiv(N, bt),)              # ragged tail handled by Pallas partial blocks

    cost = pl.CostEstimate(
        flops=int(2 * N * (n_input * h1 + h1 * h2 + h2)),
        transcendentals=int(N),
        bytes_accessed=int(N * (n_input + 1) * 4
                           + 4 * (n_input * h1 + h1 * h2 + h2 + h1 + h2 + 1)),
    )

    # Batch is tiled along the grid; weights/biases have constant block indices
    # (buffered once, not re-DMA'd per step).
    in_specs = [
        pl.BlockSpec((bt, n_input), lambda i: (i, 0)),
        pl.BlockSpec((n_input, h1), lambda i: (0, 0)),
        pl.BlockSpec((1, h1), lambda i: (0, 0)),
        pl.BlockSpec((h1, h2), lambda i: (0, 0)),
        pl.BlockSpec((1, h2), lambda i: (0, 0)),
        pl.BlockSpec((1, h2), lambda i: (0, 0)),   # w3 as a (1, h2) row
        pl.BlockSpec((1, 1), lambda i: (0, 0)),
    ]
    # Lane-dense output: one (1, bt) row per grid step; out-of-range lanes of a
    # partial last block are masked by Pallas.
    out_spec = pl.BlockSpec((1, bt), lambda i: (0, i))

    out_row = pl.pallas_call(
        _discriminator_kernel,
        out_shape=jax.ShapeDtypeStruct((1, N), jnp.float32),
        grid_spec=pltpu.PrefetchScalarGridSpec(
            num_scalar_prefetch=0,
            grid=grid,
            in_specs=in_specs,
            out_specs=out_spec,
        ),
        compiler_params=pltpu.CompilerParams(
            dimension_semantics=("parallel",),      # megacore-shardable on v7x
            vmem_limit_bytes=int(vmem_limit),
        ),
        cost_estimate=cost,
    )(z, w1, b1, w2, b2, w3_row, b3)

    # (1, N) -> (N, 1) is a free layout bitcast (same linear order).
    return out_row.reshape(N, 1)


def _xavier_uniform(key, fan_in, fan_out):
    # matches torch.nn.init.xavier_uniform (gain=1); stored as [in, out]
    bound = math.sqrt(6.0 / (fan_in + fan_out))
    return jax.random.uniform(key, (fan_in, fan_out), jnp.float32, -bound, bound)


def _linear_bias(key, fan_in, fan_out):
    # matches PyTorch nn.Linear default bias init: U(-1/sqrt(fan_in), 1/sqrt(fan_in))
    bound = 1.0 / math.sqrt(fan_in)
    return jax.random.uniform(key, (1, fan_out), jnp.float32, -bound, bound)


def init_discriminator_params(key, n_input, hidden_layers=(30, 20)):
    dims = [n_input] + list(hidden_layers) + [1]
    keys = jax.random.split(key, 2 * (len(dims) - 1))
    params = {}
    for i in range(len(dims) - 1):
        params[f"w{i+1}"] = _xavier_uniform(keys[2 * i], dims[i], dims[i + 1])
        params[f"b{i+1}"] = _linear_bias(keys[2 * i + 1], dims[i], dims[i + 1])
    return params


if __name__ == "__main__":
    key = jax.random.PRNGKey(0)
    k_z, k_z2, k_p = jax.random.split(key, 3)

    n_input = 32
    params = init_discriminator_params(k_p, n_input, hidden_layers=(30, 20))

    # reference in plain JAX f32 (matches torch module semantics)
    def ref(zf, p):
        h = jnp.maximum(zf @ p["w1"] + p["b1"], 0.0)
        h = jnp.maximum(h @ p["w2"] + p["b2"], 0.0)
        return jax.nn.sigmoid(h @ p["w3"] + p["b3"])

    # --- small batch matching the module spec (single full-extent block) ---
    N = 8
    z = jax.random.normal(k_z, (N, n_input), jnp.float32)
    out = jax.block_until_ready(discriminator_forward(z, params))
    assert out.shape == (N, 1)
    assert bool(jnp.all((out > 0.0) & (out < 1.0)))
    ref_out = ref(z, params)
    assert bool(jnp.allclose(out, ref_out, atol=1e-5, rtol=1e-5)), \
        float(jnp.max(jnp.abs(out - ref_out)))

    # --- ragged batch: >=2 "parallel" grid steps, partial last block, no pad/cast copies ---
    N2 = 300
    z2 = jax.random.normal(k_z2, (N2, n_input), jnp.float32)
    out2 = jax.block_until_ready(discriminator_forward(z2, params))
    assert out2.shape == (N2, 1)
    ref_out2 = ref(z2, params)
    assert bool(jnp.allclose(out2, ref_out2, atol=1e-5, rtol=1e-5)), \
        float(jnp.max(jnp.abs(out2 - ref_out2)))

    # --- explicit small tile exercising a longer pipelined grid ---
    out3 = jax.block_until_ready(discriminator_forward(z2, params, batch_tile=128))
    assert bool(jnp.allclose(out3, ref_out2, atol=1e-5, rtol=1e-5))

    print("KERNEL_OK")
</pallas_src>

<mosaic_0001>
module attributes {stable_mosaic.version = 11 : i64} {
  func.func @_discriminator_kernel(%arg0: i32, %arg1: memref<8x32xf32, #tpu.memory_space<vmem>>, %arg2: memref<32x30xf32, #tpu.memory_space<vmem>>, %arg3: memref<1x30xf32, #tpu.memory_space<vmem>>, %arg4: memref<30x20xf32, #tpu.memory_space<vmem>>, %arg5: memref<1x20xf32, #tpu.memory_space<vmem>>, %arg6: memref<1x20xf32, #tpu.memory_space<vmem>>, %arg7: memref<1x1xf32, #tpu.memory_space<vmem>>, %arg8: memref<1x8xf32, #tpu.memory_space<vmem>>) attributes {dimension_semantics = [#tpu.dimension_semantics<parallel>], iteration_bounds = array<i64: 1>, scalar_prefetch = 0 : i64, scratch_operands = 0 : i64, tpu.core_type = #tpu.core_type<tc>, window_params = [{transform_indices = @transform_0, window_bounds = array<i64: 8, 32>}, {pipeline_mode = #tpu.pipeline_mode<synchronous>, transform_indices = @transform_1, window_bounds = array<i64: 32, 30>}, {pipeline_mode = #tpu.pipeline_mode<synchronous>, transform_indices = @transform_2, window_bounds = array<i64: 1, 30>}, {pipeline_mode = #tpu.pipeline_mode<synchronous>, transform_indices = @transform_3, window_bounds = array<i64: 30, 20>}, {pipeline_mode = #tpu.pipeline_mode<synchronous>, transform_indices = @transform_4, window_bounds = array<i64: 1, 20>}, {pipeline_mode = #tpu.pipeline_mode<synchronous>, transform_indices = @transform_5, window_bounds = array<i64: 1, 20>}, {pipeline_mode = #tpu.pipeline_mode<synchronous>, transform_indices = @transform_6, window_bounds = array<i64: 1, 1>}, {transform_indices = @transform_7, window_bounds = array<i64: 1, 8>}]} {
    %c0 = arith.constant 0 : index
    %c0_0 = arith.constant 0 : index
    %0 = vector.load %arg1[%c0, %c0_0] : memref<8x32xf32, #tpu.memory_space<vmem>>, vector<8x32xf32>
    %c0_1 = arith.constant 0 : index
    %c0_2 = arith.constant 0 : index
    %1 = vector.load %arg2[%c0_1, %c0_2] : memref<32x30xf32, #tpu.memory_space<vmem>>, vector<32x30xf32>
    %cst = arith.constant dense<0.000000e+00> : vector<8x30xf32>
    %2 = tpu.matmul %0, %1, %cst {dimension_numbers = #tpu.dot_dimension_numbers<[1], [0], [0], [1], [0, 0, 1, 1], [], []>} : vector<8x32xf32>, vector<32x30xf32>, vector<8x30xf32> -> vector<8x30xf32>
    %c0_3 = arith.constant 0 : index
    %c0_4 = arith.constant 0 : index
    %3 = vector.load %arg3[%c0_3, %c0_4] : memref<1x30xf32, #tpu.memory_space<vmem>>, vector<1x30xf32>
    %4 = vector.broadcast %3 : vector<1x30xf32> to vector<8x30xf32>
    %5 = arith.addf %2, %4 : vector<8x30xf32>
    %cst_5 = arith.constant 0.000000e+00 : f32
    %6 = vector.broadcast %cst_5 : f32 to vector<8x30xf32>
    %7 = arith.maximumf %5, %6 : vector<8x30xf32>
    %c0_6 = arith.constant 0 : index
    %c0_7 = arith.constant 0 : index
    %8 = vector.load %arg4[%c0_6, %c0_7] : memref<30x20xf32, #tpu.memory_space<vmem>>, vector<30x20xf32>
    %cst_8 = arith.constant dense<0.000000e+00> : vector<8x20xf32>
    %9 = tpu.matmul %7, %8, %cst_8 {dimension_numbers = #tpu.dot_dimension_numbers<[1], [0], [0], [1], [0, 0, 1, 1], [], []>} : vector<8x30xf32>, vector<30x20xf32>, vector<8x20xf32> -> vector<8x20xf32>
    %c0_9 = arith.constant 0 : index
    %c0_10 = arith.constant 0 : index
    %10 = vector.load %arg5[%c0_9, %c0_10] : memref<1x20xf32, #tpu.memory_space<vmem>>, vector<1x20xf32>
    %11 = vector.broadcast %10 : vector<1x20xf32> to vector<8x20xf32>
    %12 = arith.addf %9, %11 : vector<8x20xf32>
    %cst_11 = arith.constant 0.000000e+00 : f32
    %13 = vector.broadcast %cst_11 : f32 to vector<8x20xf32>
    %14 = arith.maximumf %12, %13 : vector<8x20xf32>
    %c0_12 = arith.constant 0 : index
    %c0_13 = arith.constant 0 : index
    %15 = vector.load %arg6[%c0_12, %c0_13] : memref<1x20xf32, #tpu.memory_space<vmem>>, vector<1x20xf32>
    %16 = vector.broadcast %15 : vector<1x20xf32> to vector<8x20xf32>
    %17 = arith.mulf %14, %16 : vector<8x20xf32>
    %cst_14 = arith.constant dense<0.000000e+00> : vector<8xf32>
    %18 = vector.multi_reduction <add>, %17, %cst_14 [1] : vector<8x20xf32> to vector<8xf32>
    %19 = vector.shape_cast %18 : vector<8xf32> to vector<8x1xf32>
    %c0_15 = arith.constant 0 : index
    %c0_16 = arith.constant 0 : index
    %20 = vector.load %arg7[%c0_15, %c0_16] : memref<1x1xf32, #tpu.memory_space<vmem>>, vector<1x1xf32>
    %21 = vector.broadcast %20 : vector<1x1xf32> to vector<8x1xf32>
    %22 = arith.addf %19, %21 : vector<8x1xf32>
    %23 = tpu.transpose %22, [1, 0] : vector<8x1xf32> -> vector<1x8xf32>
    %24 = arith.negf %23 : vector<1x8xf32>
    %25 = math.exp %24 : vector<1x8xf32>
    %cst_17 = arith.constant 1.000000e+00 : f32
    %26 = vector.broadcast %cst_17 : f32 to vector<1x8xf32>
    %27 = arith.addf %26, %25 : vector<1x8xf32>
    %28 = arith.divf %26, %27 : vector<1x8xf32>
    %c0_18 = arith.constant 0 : index
    %c0_19 = arith.constant 0 : index
    %29 = vector.load %arg8[%c0_18, %c0_19] : memref<1x8xf32, #tpu.memory_space<vmem>>, vector<1x8xf32>
    tpu.vector_store %arg8[%c0_18, %c0_19], %28 {strides = array<i32>} : memref<1x8xf32, #tpu.memory_space<vmem>>, vector<1x8xf32>,
    return
  }
  func.func @transform_0(%arg0: i32) -> (i32, i32) {
    %c0_i32 = arith.constant 0 : i32
    %c0_i32_0 = arith.constant 0 : i32
    return %arg0, %c0_i32 : i32, i32
  }
  func.func @transform_1(%arg0: i32) -> (i32, i32) {
    %c0_i32 = arith.constant 0 : i32
    %c0_i32_0 = arith.constant 0 : i32
    %c0_i32_1 = arith.constant 0 : i32
    return %c0_i32, %c0_i32_0 : i32, i32
  }
  func.func @transform_2(%arg0: i32) -> (i32, i32) {
    %c0_i32 = arith.constant 0 : i32
    %c0_i32_0 = arith.constant 0 : i32
    %c0_i32_1 = arith.constant 0 : i32
    return %c0_i32, %c0_i32_0 : i32, i32
  }
  func.func @transform_3(%arg0: i32) -> (i32, i32) {
    %c0_i32 = arith.constant 0 : i32
    %c0_i32_0 = arith.constant 0 : i32
    %c0_i32_1 = arith.constant 0 : i32
    return %c0_i32, %c0_i32_0 : i32, i32
  }
  func.func @transform_4(%arg0: i32) -> (i32, i32) {
    %c0_i32 = arith.constant 0 : i32
    %c0_i32_0 = arith.constant 0 : i32
    %c0_i32_1 = arith.constant 0 : i32
    return %c0_i32, %c0_i32_0 : i32, i32
  }
  func.func @transform_5(%arg0: i32) -> (i32, i32) {
    %c0_i32 = arith.constant 0 : i32
    %c0_i32_0 = arith.constant 0 : i32
    %c0_i32_1 = arith.constant 0 : i32
    return %c0_i32, %c0_i32_0 : i32, i32
  }
  func.func @transform_6(%arg0: i32) -> (i32, i32) {
    %c0_i32 = arith.constant 0 : i32
    %c0_i32_0 = arith.constant 0 : i32
    %c0_i32_1 = arith.constant 0 : i32
    return %c0_i32, %c0_i32_0 : i32, i32
  }
  func.func @transform_7(%arg0: i32) -> (i32, i32) {
    %c0_i32 = arith.constant 0 : i32
    %c0_i32_0 = arith.constant 0 : i32
    return %c0_i32, %arg0 : i32, i32
  }
}

</mosaic_0001>

<bundles_post_ra>
// kernel: tpu_custom_call.1
= control target key start
LH: loop header
LB: loop body
LE: loop exit
PB: predicated region body
PF: predicated region fallthrough
CT: control target
= control target key end

     0   :  { %s462_s0 = inlined_call_operand.vmem [shape: f32[8,32], index: 0, kind: input, shape index: {}]   ;;  %s463_s1 = inlined_call_operand.vmem [shape: f32[32,30], index: 1, kind: input, shape index: {}]   ;;  %s464_s2 = inlined_call_operand.vmem [shape: f32[1,30], index: 2, kind: input, shape index: {}]   ;;  %s465_s3 = inlined_call_operand.vmem [shape: f32[30,20], index: 3, kind: input, shape index: {}]   ;;  %s466_s4 = inlined_call_operand.vmem [shape: f32[1,20], index: 4, kind: input, shape index: {}]   ;;  %s467_s5 = inlined_call_operand.vmem [shape: f32[1,20], index: 5, kind: input, shape index: {}]   ;;  %s468_s6 = inlined_call_operand.<no memory space> [shape: f32[1,1], index: 6, kind: input, shape index: {}]   ;;  %s469_s7 = inlined_call_operand.hbm [shape: f32[1,8], index: 7, kind: output, shape index: {}]  }
   0x1   :  { %v12_v0 = vstv %s468_s6 }
   0x2   :  { %13 = vst [vmem:[#allocation2] sm:$0x1] %v12_v0 }
   0x3   :  { %v30_v1 = vld [vmem:[%s463_s1] sm:$0xff]  ;;  %v31_v2 = vld [vmem:[%s463_s1 + $0x8] sm:$0xff]  ;;  %v32_v3 = vld [vmem:[%s463_s1 + $0x10] sm:$0xff]  ;;  %v366_v4 = vmov 0.0|0.0   ;;  %vm367_vm0 = vmmov 0   ;;  %v368_v7 = vmov 0.0  }
   0x4   :  { %320 = vmatprep.subr.bf16.mxu0 %v366_v4  ;;  %v321_v5 = vpack.c.bf16 %v31_v2, %v30_v1  ;;  %v33_v6 = vld [vmem:[%s463_s1 + $0x18] sm:$0xff]  ;;  %306 = vmatprep.mubr.msk.f32.mxu0 %vm367_vm0, %v368_v7  ;;  %v116_v8 = vld [vmem:[%s465_s3] sm:$0xff]  ;;  %v117_v9 = vld [vmem:[%s465_s3 + $0x8] sm:$0xff] }
   0x5   :  { %326 = vmatprep.subr.bf16.mxu1 %v366_v4  ;;  %317 = vmatprep.mubr.msk.f32.mxu1 %vm367_vm0, %v368_v7 }
   0x6   :  { %14 = vsyncpa [#allocation4], 0  ;;  %322 = vmatpush3.bf16.msra.mxu0 %v321_v5  ;;  %v324_v10 = vpack.c.bf16 %v33_v6, %v32_v3  ;;  %v327_v11 = vpack.c.bf16 %v117_v9, %v116_v8  ;;  %v29_v12 = vld [vmem:[%s462_s0] sm:$0xff]  ;;  %vm41_vm1 = vcmask 261120   ;;  %v118_v13 = vld [vmem:[%s465_s3 + $0x10] sm:$0xff]  ;;  %vm131_vm2 = vcmask 1045504  }
   0x7   :  { %323 = vmatprep.subr.bf16.mxu0 %v366_v4  ;;  %v119_v14 = vld [vmem:[%s465_s3 + $0x18] sm:$0x3f]  ;;  %vm369_vm3 = vmmov 1   ;;  %v280_v16 = vld [vmem:[%s464_s2] ss:$0 sm:$0xff]  ;;  %vm127_vm5 = vcmask 244736  }
   0x8   :  { %328 = vmatpush3.bf16.msra.mxu1 %v327_v11  ;;  %v330_v15 = vpack.c.bf16 %v119_v14, %v118_v13  ;;  %vm331_vm4 = vmpackc.low %vm131_vm2, %vm369_vm3  ;;  %v282_v21 = vld [vmem:[%s466_s4] ss:$0 sm:$0xff]  ;;  %vm214_vm6 = vcmask 162816   ;;  %s370_s2 = smov [#allocation3]   ;;  %vm264_vm7 = vcmask 57344  }
   0x9   :  { %329 = vmatprep.subr.bf16.mxu1 %v366_v4  ;;  %v285_v25 = vld [vmem:[%s467_s5] ss:$0 sm:$0xff]  ;;  %s272_s4 = sshll.u32 %s370_s2, 4  ;;  %s273_s4 = int_to_ptr.vmem [resolvable:$true] %s272_s4 }
   0xa   :  { %325 = vmatpush3.bf16.msra.mxu0 %v324_v10  ;;  %v286_v29 = vld [vmem:[#allocation2] ss:$0 sm:$0xff]  ;;  %s342_s5 = scalar_lea.vmem %s273_s4, 16  ;;  %s346_s23 = scalar_lea.vmem %s273_s4, 32 }
   0xb   :  { %p343_p0 = scmp.ne.s32.totalorder %s273_s4, %s342_s5  ;;  %p347_p1 = scmp.lt.s32.totalorder %s273_s4, %s273_s4 }
   0xc   :  { %332 = vmatpush3.bf16.msk.msra.mxu1 %vm331_vm4, %v330_v15  ;;  %p348_p2 = scmp.lt.s32.totalorder %s346_s23, %s342_s5 }
   0xd   :  { %307 = vmatmul.mubr.msk.f32.vlgmr.msra.gmra.mrb[0].mxu0 %vm41_vm1, %v29_v12 }
   0xe   :  { %p349_p3 = por %p348_p2, %p347_p1 }
  0x10   :  { %p350_p4 = pnand %p349_p3, %p343_p0 }
  0xe0   :  { %v111_v17 = vpop.f32.mrb[0].mxu0 }
  0xe1   :  { %v112_v18 = vadd.f32 %v280_v16, %v111_v17  ;;  %v308_v19 = vpop.f32.mrb[1].mxu0 }
  0xe3   :  { %v115_v20 = vmax.f32 %v112_v18, 0.0 }
  0xe5   :  { %318 = vmatmul.mubr.msk.f32.vlgmr.msra.gmra.mrb[0].mxu1 %vm127_vm5, %v115_v20 }
 0x1b8   :  { %v201_v22 = vpop.f32.mrb[0].mxu1 }
 0x1b9   :  { %v202_v23 = vadd.f32 %v282_v21, %v201_v22  ;;  %v319_v24 = vpop.f32.mrb[1].mxu1 }
 0x1bb   :  { %v205_v26 = vmax.f32 %v202_v23, 0.0 }
 0x1bd   :  { %v213_v27 = vmul.f32 %v285_v25, %v205_v26 }
 0x1bf   :  { %v215_v28 = vsel %vm214_vm6, %v213_v27, 0.0 }
 0x1c0   :  { %216 = vadd.xlane.f32.xlu0 %v215_v28 }
 0x24d   :  { %v217_v30 = vpop.xlane.xlu0 %216 }
 0x24e   :  { %v225_v31 = vadd.f32 %v286_v29, %v217_v30 }
 0x250   :  { %226 = vxpose.xlu0.b32.start.end [1/1] (short) (narrow) %v225_v31, 8 }
 0x2d0   :  { %v242_v32 = vpop.trf.xlu0 }
 0x2d1   :  { %v287_v33 = vmul.f32 -1.442695, %v242_v32 }
 0x2d3   :  { %338 = vpow2.f32 %v287_v33 }
 0x2dd   :  { %v339_v34 = vpop.eup %338 }
 0x2de   :  { %v261_v35 = vadd.f32 1.0, %v339_v34 }
 0x2e0   :  { %340 = vrcp.f32 %v261_v35 }
 0x2ea   :  { %v341_v36 = vpop.eup %340 }
 0x2eb   :  { %265 = vst.msk [vmem:[#allocation3] sm:$0x1] %vm264_vm7, %v341_v36 }
 0x2ec   :  { %353 = shalt.err (!%p350_p4)
}
 0x2ed   :  { %s354_s26 = scalar_lea.hbm %s469_s7, 16 }
 0x2ee   :  { %p355_p5 = scmp.ne.s32.totalorder %s469_s7, %s354_s26  ;;  %p358_p6 = scmp.lt.u32.totalorder %s354_s26, %s469_s7 }
 0x2f0   :  { %p360_p7 = pnand %p358_p6, %p355_p5 }
 0x2f2   :  { %363 = shalt.err (!%p360_p7)
}
 0x2f3   :  { %275 = dma.vmem_to_hbm [thread:$0]  %s273_s4, 16, %s469_s7, [#allocation4]  }
 0x2f4   :  { %364 = dma.done.wait [#allocation4], 16  }
 0x2f5   :  { %365 = vsyncadd [#allocation4], 4294967280 }
 0x2f6   :  { %279 = vsyncpa [#allocation4], 1 }

</bundles_post_ra>
